<compile_context>
chip_gen: v7x
topology: tpu7x:2x2x1
jax: 0.10.0
libtpu: 0.0.40
codegen_flags: <defaults>
</compile_context>

<pallas_src>
import functools

import jax
import jax.numpy as jnp
import numpy as np
from jax.experimental import pallas as pl
from jax.experimental.pallas import tpu as pltpu


# ----------------------------------------------------------------------------
# Per-generation tiling configuration.  Workload is strictly HBM-bandwidth
# bound at batch ~2, so the tile size only needs to amortize the ~0.35 us
# per-grid-step cost against the weight-tile DMA time while fitting the
# generation's scoped-VMEM budget.
# ----------------------------------------------------------------------------
def _tile_config():
    kind = ""
    try:
        kind = jax.devices()[0].device_kind.lower()
    except Exception:
        pass
    if "v7" in kind or "7x" in kind:
        # 64 MiB VMEM/TC, 3.2 TB/s: ~7 MiB weight tiles, triple-buffered.
        return dict(tk_cap=3584, tn_cap=1024, vmem_limit=40 << 20, w_buffers=3)
    if "v6" in kind:
        # 32 MiB scoped default, 1.35 TB/s: ~3.5 MiB tiles, double-buffered.
        return dict(tk_cap=2048, tn_cap=1024, vmem_limit=24 << 20, w_buffers=2)
    if "v5 lite" in kind or "v5e" in kind or "v5lite" in kind:
        # 16 MiB scoped default, 820 GB/s: 3.5 MiB tiles already near roofline.
        return dict(tk_cap=3584, tn_cap=512, vmem_limit=14 << 20, w_buffers=2)
    # Unknown / older generation: conservative caps, compiler-default VMEM.
    return dict(tk_cap=2048, tn_cap=512, vmem_limit=None, w_buffers=2)


def _pick_tile(dim, cap):
    """Largest multiple of 128 that divides `dim` and is <= cap."""
    assert dim % 128 == 0, f"feature dim {dim} must be a multiple of 128"
    t = (min(dim, cap) // 128) * 128
    while dim % t != 0:
        t -= 128
    return t


def _weight_spec(tk, tn, buffers):
    """Weight BlockSpec; request deeper pipelining when asked (v7x)."""
    index_map = lambda j, kk: (kk, j)
    if buffers and buffers > 2:
        try:
            return pl.BlockSpec((tk, tn), index_map,
                                pipeline_mode=pl.Buffered(buffers))
        except TypeError:
            pass
    return pl.BlockSpec((tk, tn), index_map)


# ----------------------------------------------------------------------------
# Kernels: one (j, k) grid step of relu(x @ W + b), K-tiled MXU accumulation.
# x_ref holds the WHOLE activation, laid out (K//tk, N, tk); x_ref[k] is the
# current reduction slab (no per-step activation DMA).
# ----------------------------------------------------------------------------
def _linear_bias_relu_kernel_scratch(x_ref, w_ref, b_ref, o_ref, acc_ref):
    """bf16 (or other non-f32) output: accumulate in an f32 VMEM scratch."""
    k = pl.program_id(1)

    @pl.when(k == 0)
    def _init():
        # Bias folded into the accumulator init (added exactly once).
        acc_ref[...] = jnp.broadcast_to(
            b_ref[...].astype(jnp.float32), acc_ref.shape)

    acc_ref[...] += jnp.dot(x_ref[k], w_ref[...],
                            preferred_element_type=jnp.float32)

    @pl.when(k == pl.num_programs(1) - 1)
    def _finalize():
        o_ref[...] = jnp.maximum(acc_ref[...], 0.0).astype(o_ref.dtype)


def _linear_bias_relu_kernel_f32acc(x_ref, w_ref, b_ref, o_ref):
    """f32 output: accumulate directly into the resident output block."""
    k = pl.program_id(1)

    @pl.when(k == 0)
    def _init():
        o_ref[...] = jnp.broadcast_to(
            b_ref[...].astype(jnp.float32), o_ref.shape)

    o_ref[...] += jnp.dot(x_ref[k], w_ref[...],
                          preferred_element_type=jnp.float32)

    @pl.when(k == pl.num_programs(1) - 1)
    def _finalize():
        o_ref[...] = jnp.maximum(o_ref[...], 0.0)


def _linear_bias_relu(x2d, w_t, b_row, out_dtype, *, tk, tn, vmem_limit,
                      w_buffers):
    """relu(x2d @ w_t + b): x2d (N,K) bf16, w_t (K,n_out) bf16, b_row (1,n_out) f32."""
    n, k_dim = x2d.shape
    k_dim_w, n_out = w_t.shape
    assert k_dim == k_dim_w
    kt = k_dim // tk
    grid = (n_out // tn, kt)   # (output-column tiles, reduction tiles)

    # Activations laid out (kt, n, tk): tiny (~100 KiB), fetched once, resident.
    x3 = x2d.reshape(n, kt, tk).transpose(1, 0, 2)

    cp_kwargs = dict(dimension_semantics=("parallel", "arbitrary"))
    if vmem_limit is not None:
        cp_kwargs["vmem_limit_bytes"] = int(vmem_limit)

    if out_dtype == jnp.float32:
        kernel = _linear_bias_relu_kernel_f32acc
        scratch = []
    else:
        kernel = _linear_bias_relu_kernel_scratch
        scratch = [pltpu.VMEM((n, tn), jnp.float32)]

    return pl.pallas_call(
        kernel,
        out_shape=jax.ShapeDtypeStruct((n, n_out), out_dtype),
        grid=grid,
        in_specs=[
            # Whole activation, constant block index -> DMA'd once, resident.
            pl.BlockSpec((kt, n, tk), lambda j, kk: (0, 0, 0)),
            # Weights: the HBM-bandwidth-dominant stream, (tk, tn) bf16 tiles.
            _weight_spec(tk, tn, w_buffers),
            # Bias: one (1, tn) strip per output-column tile.
            pl.BlockSpec((1, tn), lambda j, kk: (0, j)),
        ],
        out_specs=pl.BlockSpec((n, tn), lambda j, kk: (0, j)),
        scratch_shapes=scratch,
        compiler_params=pltpu.CompilerParams(**cp_kwargs),
    )(x3, w_t, b_row)


# ----------------------------------------------------------------------------
# Module-level API
# ----------------------------------------------------------------------------
def prepare_head_common_params(w1, b1, w2, b2):
    """One-time weight preprocessing (hoisted OUT of the per-step forward).

    w1/w2 arrive in PyTorch nn.Linear layout (out, in); they are transposed to
    (in, out) and cast to bf16 here, so every forward streams exactly one bf16
    copy of each weight matrix from HBM (no per-call f32->bf16 cast traffic).
    """
    return dict(
        w1=jnp.asarray(w1).T.astype(jnp.bfloat16),
        b1=jnp.asarray(b1).astype(jnp.float32).reshape(1, -1),
        w2=jnp.asarray(w2).T.astype(jnp.bfloat16),
        b2=jnp.asarray(b2).astype(jnp.float32).reshape(1, -1),
    )


def head_common_forward(x_nchw, params, *, tk_cap=None, tn_cap=None):
    """HeadCommon.forward (vgg16 branch, eval mode, is_mask=False)."""
    cfg = _tile_config()
    if tk_cap is None:
        tk_cap = cfg["tk_cap"]
    if tn_cap is None:
        tn_cap = cfg["tn_cap"]
    vmem_limit = cfg["vmem_limit"]
    w_buffers = cfg["w_buffers"]

    n = x_nchw.shape[0]
    # == torch x.view(N, -1) on a contiguous NCHW tensor; activations in bf16.
    x2d = x_nchw.reshape(n, -1).astype(jnp.bfloat16)

    w1, b1, w2, b2 = params["w1"], params["b1"], params["w2"], params["b2"]

    # TODO(synk): nn.Dropout layers are identity here (eval mode); training-mode
    # dropout would use pltpu.prng_seed / pltpu.prng_random_bits.
    tk1 = _pick_tile(x2d.shape[1], tk_cap)
    tn1 = _pick_tile(w1.shape[1], tn_cap)
    h1 = _linear_bias_relu(x2d, w1, b1, jnp.bfloat16,
                           tk=tk1, tn=tn1, vmem_limit=vmem_limit,
                           w_buffers=w_buffers)                 # Linear1 + ReLU

    tk2 = _pick_tile(w2.shape[0], tk_cap)
    tn2 = _pick_tile(w2.shape[1], tn_cap)
    # The kernel's ReLU also covers the trailing F.relu in forward() — it is
    # idempotent after the classifier's second ReLU.
    out = _linear_bias_relu(h1, w2, b2, jnp.float32,
                            tk=tk2, tn=tn2, vmem_limit=vmem_limit,
                            w_buffers=w_buffers)                # Linear2 + ReLU
    return out


if __name__ == "__main__":
    # Small shapes consistent with the forward: a conv feature map flattened
    # to D_in, followed by two Linear layers of hidden width HID
    # (HID stands in for vgg16's 4096; D_in for 25088).
    N, C, H, W = 2, 4, 16, 16
    D_IN = C * H * W        # 1024
    HID = 256

    key = jax.random.PRNGKey(0)
    kx, kw1, kb1, kw2, kb2 = jax.random.split(key, 5)

    x = jax.random.normal(kx, (N, C, H, W), dtype=jnp.float32)
    # PyTorch nn.Linear stores weight as (out, in); sample in that layout.
    w1 = jax.random.normal(kw1, (HID, D_IN), dtype=jnp.float32) * 0.05
    b1 = jax.random.normal(kb1, (HID,), dtype=jnp.float32) * 0.05
    w2 = jax.random.normal(kw2, (HID, HID), dtype=jnp.float32) * 0.05
    b2 = jax.random.normal(kb2, (HID,), dtype=jnp.float32) * 0.05

    # One-time param preparation (transpose + bf16 cast hoisted out of forward).
    params = jax.tree_util.tree_map(jax.block_until_ready,
                                    prepare_head_common_params(w1, b1, w2, b2))

    # Pure-JAX reference of the same bf16-streamed forward pass.
    # NOTE: this checks kernel vs bf16-matched math; bf16 weights + bf16 h1
    # introduce ~1e-2-relative drift vs the true f32 PyTorch model.
    x2d_r = x.reshape(N, -1).astype(jnp.bfloat16).astype(jnp.float32)
    w1_r = params["w1"].astype(jnp.float32)
    w2_r = params["w2"].astype(jnp.float32)
    h1_r = jnp.maximum(x2d_r @ w1_r + params["b1"], 0.0)
    h1_r = h1_r.astype(jnp.bfloat16).astype(jnp.float32)   # kernel emits h1 in bf16
    ref = jnp.maximum(h1_r @ w2_r + params["b2"], 0.0)
    ref = jnp.maximum(ref, 0.0)                             # trailing F.relu (idempotent)

    # Run 1: per-generation production tile caps.
    out = head_common_forward(x, params)
    out = jax.block_until_ready(out)
    assert out.shape == (N, HID), out.shape
    np.testing.assert_allclose(np.asarray(out), np.asarray(ref),
                               rtol=2e-3, atol=2e-3)

    # Run 2: tiny tile caps to exercise the multi-step K-reduction paths
    # (scratch-accumulator kernel for layer 1, direct-f32-accumulate kernel
    # for layer 2) on the same toy shapes.
    out_tiled = head_common_forward(x, params, tk_cap=128, tn_cap=128)
    out_tiled = jax.block_until_ready(out_tiled)
    np.testing.assert_allclose(np.asarray(out_tiled), np.asarray(ref),
                               rtol=2e-3, atol=2e-3)

    print("KERNEL_OK")
</pallas_src>

<mosaic_0001>
module attributes {stable_mosaic.version = 11 : i64} {
  func.func @_linear_bias_relu_kernel_scratch(%arg0: i32, %arg1: i32, %arg2: memref<1x2x1024xbf16, #tpu.memory_space<vmem>>, %arg3: memref<1024x256xbf16, #tpu.memory_space<vmem>>, %arg4: memref<1x256xf32, #tpu.memory_space<vmem>>, %arg5: memref<2x256xbf16, #tpu.memory_space<vmem>>, %arg6: memref<2x256xf32, #tpu.memory_space<vmem>>) attributes {dimension_semantics = [#tpu.dimension_semantics<parallel>, #tpu.dimension_semantics<arbitrary>], iteration_bounds = array<i64: 1, 1>, scalar_prefetch = 0 : i64, scratch_operands = 1 : i64, tpu.core_type = #tpu.core_type<tc>, window_params = [{pipeline_mode = #tpu.pipeline_mode<synchronous>, transform_indices = @transform_0, window_bounds = array<i64: 1, 2, 1024>}, {transform_indices = @transform_1, window_bounds = array<i64: 1024, 256>}, {transform_indices = @transform_2, window_bounds = array<i64: 1, 256>}, {transform_indices = @transform_3, window_bounds = array<i64: 2, 256>}]} {
    %c0_i32 = arith.constant 0 : i32
    %0 = arith.cmpi eq, %arg1, %c0_i32 : i32
    %1 = arith.extui %0 : i1 to i32
    %c0_i32_0 = arith.constant 0 : i32
    %2 = arith.cmpi ne, %1, %c0_i32_0 : i32
    scf.if %2 {
      %c0_10 = arith.constant 0 : index
      %c0_11 = arith.constant 0 : index
      %14 = vector.load %arg4[%c0_10, %c0_11] : memref<1x256xf32, #tpu.memory_space<vmem>>, vector<1x256xf32>
      %15 = vector.shape_cast %14 : vector<1x256xf32> to vector<1x256xf32>
      %16 = vector.broadcast %15 : vector<1x256xf32> to vector<2x256xf32>
      %c0_12 = arith.constant 0 : index
      %c0_13 = arith.constant 0 : index
      %17 = vector.load %arg6[%c0_12, %c0_13] : memref<2x256xf32, #tpu.memory_space<vmem>>, vector<2x256xf32>
      tpu.vector_store %arg6[%c0_12, %c0_13], %16 {strides = array<i32>} : memref<2x256xf32, #tpu.memory_space<vmem>>, vector<2x256xf32>,
    } else {
    }
    %c0 = arith.constant 0 : index
    %c0_1 = arith.constant 0 : index
    %3 = vector.load %arg6[%c0, %c0_1] : memref<2x256xf32, #tpu.memory_space<vmem>>, vector<2x256xf32>
    %4 = arith.index_cast %arg1 : i32 to index
    %c0_2 = arith.constant 0 : index
    %c0_3 = arith.constant 0 : index
    %5 = vector.load %arg2[%4, %c0_2, %c0_3] : memref<1x2x1024xbf16, #tpu.memory_space<vmem>>, vector<1x2x1024xbf16>
    %6 = vector.shape_cast %5 : vector<1x2x1024xbf16> to vector<2x1024xbf16>
    %c0_4 = arith.constant 0 : index
    %c0_5 = arith.constant 0 : index
    %7 = vector.load %arg3[%c0_4, %c0_5] : memref<1024x256xbf16, #tpu.memory_space<vmem>>, vector<1024x256xbf16>
    %cst = arith.constant dense<0.000000e+00> : vector<2x256xf32>
    %8 = tpu.matmul %6, %7, %cst {dimension_numbers = #tpu.dot_dimension_numbers<[1], [0], [0], [1], [0, 0, 1, 1], [], []>} : vector<2x1024xbf16>, vector<1024x256xbf16>, vector<2x256xf32> -> vector<2x256xf32>
    %9 = arith.addf %3, %8 : vector<2x256xf32>
    %c0_6 = arith.constant 0 : index
    %c0_7 = arith.constant 0 : index
    %10 = vector.load %arg6[%c0_6, %c0_7] : memref<2x256xf32, #tpu.memory_space<vmem>>, vector<2x256xf32>
    tpu.vector_store %arg6[%c0_6, %c0_7], %9 {strides = array<i32>} : memref<2x256xf32, #tpu.memory_space<vmem>>, vector<2x256xf32>,
    %c0_i32_8 = arith.constant 0 : i32
    %11 = arith.cmpi eq, %arg1, %c0_i32_8 : i32
    %12 = arith.extui %11 : i1 to i32
    %c0_i32_9 = arith.constant 0 : i32
    %13 = arith.cmpi ne, %12, %c0_i32_9 : i32
    scf.if %13 {
      %c0_10 = arith.constant 0 : index
      %c0_11 = arith.constant 0 : index
      %14 = vector.load %arg6[%c0_10, %c0_11] : memref<2x256xf32, #tpu.memory_space<vmem>>, vector<2x256xf32>
      %cst_12 = arith.constant 0.000000e+00 : f32
      %15 = vector.broadcast %cst_12 : f32 to vector<2x256xf32>
      %16 = arith.maximumf %14, %15 : vector<2x256xf32>
      %17 = arith.truncf %16 : vector<2x256xf32> to vector<2x256xbf16>
      %c0_13 = arith.constant 0 : index
      %c0_14 = arith.constant 0 : index
      %18 = vector.load %arg5[%c0_13, %c0_14] : memref<2x256xbf16, #tpu.memory_space<vmem>>, vector<2x256xbf16>
      tpu.vector_store %arg5[%c0_13, %c0_14], %17 {strides = array<i32>} : memref<2x256xbf16, #tpu.memory_space<vmem>>, vector<2x256xbf16>,
    } else {
    }
    return
  }
  func.func @transform_0(%arg0: i32, %arg1: i32) -> (i32, i32, i32) {
    %c0_i32 = arith.constant 0 : i32
    %c0_i32_0 = arith.constant 0 : i32
    %c0_i32_1 = arith.constant 0 : i32
    %c0_i32_2 = arith.constant 0 : i32
    return %c0_i32, %c0_i32_0, %c0_i32_1 : i32, i32, i32
  }
  func.func @transform_1(%arg0: i32, %arg1: i32) -> (i32, i32) {
    %c0_i32 = arith.constant 0 : i32
    return %arg1, %arg0 : i32, i32
  }
  func.func @transform_2(%arg0: i32, %arg1: i32) -> (i32, i32) {
    %c0_i32 = arith.constant 0 : i32
    %c0_i32_0 = arith.constant 0 : i32
    return %c0_i32, %arg0 : i32, i32
  }
  func.func @transform_3(%arg0: i32, %arg1: i32) -> (i32, i32) {
    %c0_i32 = arith.constant 0 : i32
    %c0_i32_0 = arith.constant 0 : i32
    return %c0_i32, %arg0 : i32, i32
  }
}

</mosaic_0001>

<bundles_post_ra>
// kernel: tpu_custom_call.1
= control target key start
LH: loop header
LB: loop body
LE: loop exit
PB: predicated region body
PF: predicated region fallthrough
CT: control target
= control target key end

     0   :  { %8 = vsyncpa [#allocation4], 0  ;;  %s1636_s0 = inlined_call_operand.hbm [shape: bf16[1,2,1024], index: 0, kind: input, shape index: {}]   ;;  %s1637_s1 = inlined_call_operand.hbm [shape: bf16[1024,256], index: 1, kind: input, shape index: {}]   ;;  %s1638_s2 = inlined_call_operand.vmem [shape: f32[1,256], index: 2, kind: input, shape index: {}]   ;;  %s1639_s3 = inlined_call_operand.hbm [shape: bf16[2,256], index: 3, kind: output, shape index: {}]  }
   0x1   :  { %9 = vsyncpa [#allocation7], 0 }
   0x2   :  { %10 = vsyncpa [#allocation5], 0  ;;  %s1538_s12 = smov [#allocation3]   ;;  %s1539_s14 = smov [#allocation6]  }
   0x3   :  { %s17_s13 = sshll.u32 %s1538_s12, 4  ;;  %s26_s15 = sshll.u32 %s1539_s14, 4  ;;  %s18_s13 = int_to_ptr.vmem [resolvable:$true] %s17_s13  ;;  %s1565_s15 = int_to_ptr.vmem [resolvable:$true] %s26_s15 }
   0x4   :  { %s1466_s18 = scalar_lea.hbm %s1636_s0, 128 }
   0x5   :  { %p1467_p0 = scmp.ne.s32.totalorder %s1636_s0, %s1466_s18  ;;  %p1470_p1 = scmp.lt.u32.totalorder %s1466_s18, %s1636_s0 }
   0x7   :  { %p1472_p2 = pnand %p1470_p1, %p1467_p0 }
   0x9   :  { %1475 = shalt.err (!%p1472_p2)
}
   0xa   :  { %s1476_s23 = scalar_lea.vmem %s18_s13, 128  ;;  %p1481_p4 = scmp.lt.s32.totalorder %s18_s13, %s18_s13 }
   0xb   :  { %p1477_p3 = scmp.ne.s32.totalorder %s18_s13, %s1476_s23  ;;  %p1482_p5 = scmp.lt.s32.totalorder %s1476_s23, %s1476_s23 }
   0xd   :  { %p1483_p6 = por %p1482_p5, %p1481_p4 }
   0xf   :  { %p1484_p7 = pnand %p1483_p6, %p1477_p3 }
  0x11   :  { %1487 = shalt.err (!%p1484_p7)
}
  0x12   :  { %20 = dma.hbm_to_vmem [thread:$0]  %s1636_s0, 128, %s18_s13, [#allocation4]  }
  0x13   :  { %s1488_s28 = scalar_lea.hbm %s1637_s1, 16384 }
  0x14   :  { %p1489_p8 = scmp.ne.s32.totalorder %s1637_s1, %s1488_s28  ;;  %p1492_p9 = scmp.lt.u32.totalorder %s1488_s28, %s1637_s1 }
  0x16   :  { %p1494_p10 = pnand %p1492_p9, %p1489_p8 }
  0x18   :  { %1497 = shalt.err (!%p1494_p10)
}
  0x19   :  { %s1498_s6 = scalar_lea.vmem %s1565_s15, 16384  ;;  %p1503_p12 = scmp.lt.s32.totalorder %s1565_s15, %s1565_s15 }
  0x1a   :  { %p1499_p11 = scmp.ne.s32.totalorder %s1565_s15, %s1498_s6  ;;  %p1504_p13 = scmp.lt.s32.totalorder %s1498_s6, %s1498_s6 }
  0x1c   :  { %p1505_p0 = por %p1504_p13, %p1503_p12 }
  0x1e   :  { %p1506_p1 = pnand %p1505_p0, %p1499_p11 }
  0x20   :  { %1509 = shalt.err (!%p1506_p1)
}
  0x21   :  { %s1540_s0 = smov 128   ;;  %s1541_s7 = smov 8  }
  0x22   :  { %32 = dma.hbm_to_vmem [thread:$0]  %s1637_s1, 16384, %s1565_s15, [#allocation7], %s1540_s0, %s1540_s0, %s1541_s7  }
  0x23   :  { %1532 = dma.done.wait [#allocation4], 128  }
  0x24   :  { %1533 = vsyncadd [#allocation4], 4294967168 }
  0x25   :  { %1534 = dma.done.wait [#allocation7], 16384  }
  0x26   :  { %1535 = vsyncadd [#allocation7], 4294950912  ;;  %v1273_v0 = vld [vmem:[#allocation6 + $0x4] ss:$8 sps:$4 sm:$0xff]   ;;  %v1277_v2 = vld [vmem:[#allocation6] ss:$8 sps:$4 sm:$0xff]   ;;  %v47_v36 = vlaneseq }
  0x27   :  { %v1275_v1 = vld [vmem:[#allocation6 + $0x204] ss:$8 sps:$4 sm:$0xff]   ;;  %895 = vmatprep.subr.bf16.mxu1 %v1273_v0  ;;  %v1278_v3 = vld [vmem:[#allocation6 + $0x200] ss:$8 sps:$4 sm:$0xff]   ;;  %v1279_v4 = vld [vmem:[#allocation6 + $0x14] ss:$8 sps:$4 sm:$0xff]  }
  0x28   :  { %977 = vmatprep.subr.bf16.mxu0 %v1275_v1  ;;  %896 = vmatpush1.bf16.msra.mxu1 %v1277_v2  ;;  %v1281_v5 = vld [vmem:[#allocation6 + $0x214] ss:$8 sps:$4 sm:$0xff]   ;;  %v1283_v6 = vld [vmem:[#allocation6 + $0x10] ss:$8 sps:$4 sm:$0xff]   ;;  %v1285_v8 = vld [vmem:[#allocation6 + $0x24] ss:$8 sps:$4 sm:$0xff]  }
  0x29   :  { %978 = vmatpush1.bf16.msra.mxu0 %v1278_v3  ;;  %897 = vmatprep.subr.bf16.mxu1 %v1279_v4  ;;  %v1284_v7 = vld [vmem:[#allocation6 + $0x210] ss:$8 sps:$4 sm:$0xff]   ;;  %v1287_v9 = vld [vmem:[#allocation6 + $0x224] ss:$8 sps:$4 sm:$0xff]   ;;  %v1289_v10 = vld [vmem:[#allocation6 + $0x20] ss:$8 sps:$4 sm:$0xff]  }
  0x2a   :  { %979 = vmatprep.subr.bf16.mxu0 %v1281_v5  ;;  %v1290_v11 = vld [vmem:[#allocation6 + $0x220] ss:$8 sps:$4 sm:$0xff]   ;;  %v1291_v12 = vld [vmem:[#allocation6 + $0x34] ss:$8 sps:$4 sm:$0xff]   ;;  %v1295_v14 = vld [vmem:[#allocation6 + $0x30] ss:$8 sps:$4 sm:$0xff]  }
  0x2b   :  { %v1293_v13 = vld [vmem:[#allocation6 + $0x234] ss:$8 sps:$4 sm:$0xff]   ;;  %v1296_v15 = vld [vmem:[#allocation6 + $0x230] ss:$8 sps:$4 sm:$0xff]   ;;  %v1297_v16 = vld [vmem:[#allocation6 + $0x44] ss:$8 sps:$4 sm:$0xff]  }
  0x2c   :  { %898 = vmatpush1.bf16.msra.mxu1 %v1283_v6  ;;  %v1299_v17 = vld [vmem:[#allocation6 + $0x244] ss:$8 sps:$4 sm:$0xff]   ;;  %v1301_v18 = vld [vmem:[#allocation6 + $0x40] ss:$8 sps:$4 sm:$0xff]   ;;  %v1303_v20 = vld [vmem:[#allocation6 + $0x54] ss:$8 sps:$4 sm:$0xff]  }
  0x2d   :  { %980 = vmatpush1.bf16.msra.mxu0 %v1284_v7  ;;  %899 = vmatprep.subr.bf16.mxu1 %v1285_v8  ;;  %v1302_v19 = vld [vmem:[#allocation6 + $0x240] ss:$8 sps:$4 sm:$0xff]   ;;  %v1305_v21 = vld [vmem:[#allocation6 + $0x254] ss:$8 sps:$4 sm:$0xff]   ;;  %v1307_v22 = vld [vmem:[#allocation6 + $0x50] ss:$8 sps:$4 sm:$0xff]  }
  0x2e   :  { %981 = vmatprep.subr.bf16.mxu0 %v1287_v9  ;;  %v1308_v23 = vld [vmem:[#allocation6 + $0x250] ss:$8 sps:$4 sm:$0xff]   ;;  %v1309_v24 = vld [vmem:[#allocation6 + $0x64] ss:$8 sps:$4 sm:$0xff]   ;;  %v1313_v26 = vld [vmem:[#allocation6 + $0x60] ss:$8 sps:$4 sm:$0xff]  }
  0x2f   :  { %v1311_v25 = vld [vmem:[#allocation6 + $0x264] ss:$8 sps:$4 sm:$0xff]   ;;  %v1314_v27 = vld [vmem:[#allocation6 + $0x260] ss:$8 sps:$4 sm:$0xff]   ;;  %v1315_v28 = vld [vmem:[#allocation6 + $0x74] ss:$8 sps:$4 sm:$0xff]  }
  0x30   :  { %900 = vmatpush1.bf16.msra.mxu1 %v1289_v10  ;;  %v1317_v29 = vld [vmem:[#allocation6 + $0x274] ss:$8 sps:$4 sm:$0xff]   ;;  %v1319_v30 = vld [vmem:[#allocation6 + $0x70] ss:$8 sps:$4 sm:$0xff]   ;;  %v1321_v32 = vld [vmem:[#allocation6 + $0x84] ss:$8 sps:$4 sm:$0xff]  }
  0x31   :  { %982 = vmatpush1.bf16.msra.mxu0 %v1290_v11  ;;  %901 = vmatprep.subr.bf16.mxu1 %v1291_v12  ;;  %v1320_v31 = vld [vmem:[#allocation6 + $0x270] ss:$8 sps:$4 sm:$0xff]   ;;  %v1323_v33 = vld [vmem:[#allocation6 + $0x284] ss:$8 sps:$4 sm:$0xff]   ;;  %v1325_v34 = vld [vmem:[#allocation6 + $0x80] ss:$8 sps:$4 sm:$0xff]  }
  0x32   :  { %983 = vmatprep.subr.bf16.mxu0 %v1293_v13  ;;  %v1326_v35 = vld [vmem:[#allocation6 + $0x280] ss:$8 sps:$4 sm:$0xff]   ;;  %v1542_v37 = vmov 1966171168   ;;  %v1327_v39 = vld [vmem:[#allocation6 + $0x94] ss:$8 sps:$4 sm:$0xff]  }
  0x33   :  { %v200_v38 = vunpack.c.l.s4 %v1542_v37  ;;  %v1329_v40 = vld [vmem:[#allocation6 + $0x294] ss:$8 sps:$4 sm:$0xff]   ;;  %v1331_v41 = vld [vmem:[#allocation6 + $0x90] ss:$8 sps:$4 sm:$0xff]   ;;  %v1596_v42 = vshrl.u32 %v47_v36, 7 }
  0x34   :  { %902 = vmatpush1.bf16.msra.mxu1 %v1295_v14  ;;  %v1332_v44 = vld [vmem:[#allocation6 + $0x290] ss:$8 sps:$4 sm:$0xff]   ;;  %v1333_v45 = vld [vmem:[#allocation6 + $0xa4] ss:$8 sps:$4 sm:$0xff]   ;;  %v1337_v47 = vld [vmem:[#allocation6 + $0xa0] ss:$8 sps:$4 sm:$0xff]  }
  0x35   :  { %984 = vmatpush1.bf16.msra.mxu0 %v1296_v15  ;;  %903 = vmatprep.subr.bf16.mxu1 %v1297_v16  ;;  %v201_v43 = vunpack.c.0.s8 %v200_v38  ;;  %v1335_v46 = vld [vmem:[#allocation6 + $0x2a4] ss:$8 sps:$4 sm:$0xff]   ;;  %v1338_v48 = vld [vmem:[#allocation6 + $0x2a0] ss:$8 sps:$4 sm:$0xff]   ;;  %v1339_v50 = vld [vmem:[#allocation6 + $0xb4] ss:$8 sps:$4 sm:$0xff]  }
  0x36   :  { %985 = vmatprep.subr.bf16.mxu0 %v1299_v17  ;;  %v1341_v51 = vld [vmem:[#allocation6 + $0x2b4] ss:$8 sps:$4 sm:$0xff]   ;;  %v1343_v53 = vld [vmem:[#allocation6 + $0xb0] ss:$8 sps:$4 sm:$0xff]   ;;  %v1345_v57 = vld [vmem:[#allocation6 + $0xc4] ss:$8 sps:$4 sm:$0xff]  }
  0x37   :  { %v1599_v49 = vsub.s32 %v201_v43, %v1596_v42  ;;  %v68_v52 = vld [vmem:[#allocation3] sm:$0xff]  ;;  %v1347_v58 = vld [vmem:[#allocation6 + $0x2c4] ss:$8 sps:$4 sm:$0xff]   ;;  %v1349_v61 = vld [vmem:[#allocation6 + $0xc0] ss:$8 sps:$4 sm:$0xff]  }
  0x38   :  { %904 = vmatpush1.bf16.msra.mxu1 %v1301_v18  ;;  %v198_v55 = vcombine.high %v68_v52, %v68_v52  ;;  %v1344_v56 = vld [vmem:[#allocation6 + $0x2b0] ss:$8 sps:$4 sm:$0xff]   ;;  %v1350_v0 = vld [vmem:[#allocation6 + $0x2c0] ss:$8 sps:$4 sm:$0xff]   ;;  %v1351_v1 = vld [vmem:[#allocation6 + $0xd4] ss:$8 sps:$4 sm:$0xff]  }
  0x39   :  { %986 = vmatpush1.bf16.msra.mxu0 %v1302_v19  ;;  %905 = vmatprep.subr.bf16.mxu1 %v1303_v20  ;;  %v205_v54 = vrot.slane %v68_v52, %v1599_v49  ;;  %v1353_v2 = vld [vmem:[#allocation6 + $0x2d4] ss:$8 sps:$4 sm:$0xff]   ;;  %v1355_v4 = vld [vmem:[#allocation6 + $0xd0] ss:$8 sps:$4 sm:$0xff]   ;;  %v1357_v6 = vld [vmem:[#allocation6 + $0xe4] ss:$8 sps:$4 sm:$0xff]  }
  0x3a   :  { %987 = vmatprep.subr.bf16.mxu0 %v1305_v21  ;;  %v212_v60 = vrot.slane %v198_v55, %v1599_v49  ;;  %v1356_v5 = vld [vmem:[#allocation6 + $0x2d0] ss:$8 sps:$4 sm:$0xff]   ;;  %v1359_v7 = vld [vmem:[#allocation6 + $0x2e4] ss:$8 sps:$4 sm:$0xff]   ;;  %v1361_v8 = vld [vmem:[#allocation6 + $0xe0] ss:$8 sps:$4 sm:$0xff]  }
  0x3b   :  { %v213_v59 = vcombine.high %v205_v54, %v205_v54  ;;  %v1362_v9 = vld [vmem:[#allocation6 + $0x2e0] ss:$8 sps:$4 sm:$0xff]   ;;  %v1363_v10 = vld [vmem:[#allocation6 + $0xf4] ss:$8 sps:$4 sm:$0xff]   ;;  %v1367_v12 = vld [vmem:[#allocation6 + $0xf0] ss:$8 sps:$4 sm:$0xff]   ;;  %v1606_v17 = vrot.slane %v205_v54, %v1599_v49 }
  0x3c   :  { %906 = vmatpush1.bf16.msra.mxu1 %v1307_v22  ;;  %v214_v63 = vcombine.high %v212_v60, %v212_v60  ;;  %v1365_v11 = vld [vmem:[#allocation6 + $0x2f4] ss:$8 sps:$4 sm:$0xff]   ;;  %v1368_v13 = vld [vmem:[#allocation6 + $0x2f0] ss:$8 sps:$4 sm:$0xff]   ;;  %v1371_v14 = vld [vmem:[#allocation6 + $0x104] ss:$8 sps:$4 sm:$0xff]   ;;  %v1609_v18 = vrot.slane %v212_v60, %v1599_v49 }
  0x3d   :  { %988 = vmatpush1.bf16.msra.mxu0 %v1308_v23  ;;  %907 = vmatprep.subr.bf16.mxu1 %v1309_v24  ;;  %v235_v62 = vrot.slane %v213_v59, %v1599_v49  ;;  %v1375_v15 = vld [vmem:[#allocation6 + $0x304] ss:$8 sps:$4 sm:$0xff]   ;;  %v1369_v16 = vld [vmem:[#allocation6 + $0x100] ss:$8 sps:$4 sm:$0xff]   ;;  %v1378_v20 = vld [vmem:[#allocation6 + $0x114] ss:$8 sps:$4 sm:$0xff]  }
  0x3e   :  { %989 = vmatprep.subr.bf16.mxu0 %v1311_v25  ;;  %v242_v3 = vrot.slane %v214_v63, %v1599_v49  ;;  %v1373_v19 = vld [vmem:[#allocation6 + $0x300] ss:$8 sps:$4 sm:$0xff]   ;;  %v1381_v21 = vld [vmem:[#allocation6 + $0x314] ss:$8 sps:$4 sm:$0xff]   ;;  %v1376_v24 = vld [vmem:[#allocation6 + $0x110] ss:$8 sps:$4 sm:$0xff]  }
  0x3f   :  { %927 = vmatprep.mubr.bf16.mxu1 %v235_v62  ;;  %v245_v22 = vcombine.high %v235_v62, %v235_v62  ;;  %v1379_v25 = vld [vmem:[#allocation6 + $0x310] ss:$8 sps:$4 sm:$0xff]   ;;  %v1394_v36 = vld [vmem:[#allocation6 + $0x140] ss:$8 sps:$4 sm:$0xff]   ;;  %v1402_v38 = vld [vmem:[#allocation6 + $0x154] ss:$8 sps:$4 sm:$0xff]  }
  0x40   :  { %908 = vmatpush1.bf16.msra.mxu1 %v1313_v26  ;;  %1009 = vmatprep.mubr.bf16.mxu0 %v242_v3  ;;  %v246_v23 = vcombine.high %v242_v3, %v242_v3  ;;  %v1384_v26 = vld [vmem:[#allocation6 + $0x124] ss:$8 sps:$4 sm:$0xff]   ;;  %v1397_v37 = vld [vmem:[#allocation6 + $0x340] ss:$8 sps:$4 sm:$0xff]   ;;  %v1427_v59 = vld [vmem:[#allocation6 + $0x390] ss:$8 sps:$4 sm:$0xff]  }
  0x41   :  { %990 = vmatpush1.bf16.msra.mxu0 %v1314_v27  ;;  %909 = vmatprep.subr.bf16.mxu1 %v1315_v28  ;;  %v1387_v27 = vld [vmem:[#allocation6 + $0x324] ss:$8 sps:$4 sm:$0xff]   ;;  %v1382_v28 = vld [vmem:[#allocation6 + $0x120] ss:$8 sps:$4 sm:$0xff]   ;;  %v1439_v3 = vld [vmem:[#allocation6 + $0x3b0] ss:$8 sps:$4 sm:$0xff]  }
  0x42   :  { %991 = vmatprep.subr.bf16.mxu0 %v1317_v29  ;;  %v1385_v29 = vld [vmem:[#allocation6 + $0x320] ss:$8 sps:$4 sm:$0xff]   ;;  %v1408_v43 = vld [vmem:[#allocation6 + $0x164] ss:$8 sps:$4 sm:$0xff]  }
  0x43   :  { %v1420_v52 = vld [vmem:[#allocation6 + $0x184] ss:$8 sps:$4 sm:$0xff]   ;;  %v1418_v54 = vld [vmem:[#allocation6 + $0x180] ss:$8 sps:$4 sm:$0xff]  }
  0x44   :  { %910 = vmatpush1.bf16.msra.mxu1 %v1319_v30  ;;  %v1390_v30 = vld [vmem:[#allocation6 + $0x134] ss:$8 sps:$4 sm:$0xff]   ;;  %v1421_v55 = vld [vmem:[#allocation6 + $0x380] ss:$8 sps:$4 sm:$0xff]   ;;  %v1432_v60 = vld [vmem:[#allocation6 + $0x1a4] ss:$8 sps:$4 sm:$0xff]  }
  0x45   :  { %992 = vmatpush1.bf16.msra.mxu0 %v1320_v31  ;;  %911 = vmatprep.subr.bf16.mxu1 %v1321_v32  ;;  %v1393_v31 = vld [vmem:[#allocation6 + $0x334] ss:$8 sps:$4 sm:$0xff]   ;;  %v1388_v32 = vld [vmem:[#allocation6 + $0x130] ss:$8 sps:$4 sm:$0xff]   ;;  %v1430_v62 = vld [vmem:[#allocation6 + $0x1a0] ss:$8 sps:$4 sm:$0xff]  }
  0x46   :  { %993 = vmatprep.subr.bf16.mxu0 %v1323_v33  ;;  %v1391_v33 = vld [vmem:[#allocation6 + $0x330] ss:$8 sps:$4 sm:$0xff]   ;;  %v1433_v63 = vld [vmem:[#allocation6 + $0x3a0] ss:$8 sps:$4 sm:$0xff]  }
  0x48   :  { %912 = vmatpush1.bf16.msra.mxu1 %v1325_v34  ;;  %v1396_v34 = vld [vmem:[#allocation6 + $0x144] ss:$8 sps:$4 sm:$0xff]  }
  0x49   :  { %994 = vmatpush1.bf16.msra.mxu0 %v1326_v35  ;;  %913 = vmatprep.subr.bf16.mxu1 %v1327_v39  ;;  %v1399_v35 = vld [vmem:[#allocation6 + $0x344] ss:$8 sps:$4 sm:$0xff]   ;;  %v1405_v39 = vld [vmem:[#allocation6 + $0x354] ss:$8 sps:$4 sm:$0xff]  }
  0x4a   :  { %995 = vmatprep.subr.bf16.mxu0 %v1329_v40  ;;  %v1400_v40 = vld [vmem:[#allocation6 + $0x150] ss:$8 sps:$4 sm:$0xff]  }
  0x4c   :  { %914 = vmatpush1.bf16.msra.mxu1 %v1331_v41  ;;  %v1403_v41 = vld [vmem:[#allocation6 + $0x350] ss:$8 sps:$4 sm:$0xff]  }
  0x4d   :  { %996 = vmatpush1.bf16.msra.mxu0 %v1332_v44  ;;  %915 = vmatprep.subr.bf16.mxu1 %v1333_v45  ;;  %v1411_v44 = vld [vmem:[#allocation6 + $0x364] ss:$8 sps:$4 sm:$0xff]   ;;  %v1406_v45 = vld [vmem:[#allocation6 + $0x160] ss:$8 sps:$4 sm:$0xff]  }
  0x4e   :  { %997 = vmatprep.subr.bf16.mxu0 %v1335_v46  ;;  %v1409_v46 = vld [vmem:[#allocation6 + $0x360] ss:$8 sps:$4 sm:$0xff]  }
  0x50   :  { %916 = vmatpush1.bf16.msra.mxu1 %v1337_v47  ;;  %v1414_v47 = vld [vmem:[#allocation6 + $0x174] ss:$8 sps:$4 sm:$0xff]  }
  0x51   :  { %998 = vmatpush1.bf16.msra.mxu0 %v1338_v48  ;;  %917 = vmatprep.subr.bf16.mxu1 %v1339_v50  ;;  %v1417_v48 = vld [vmem:[#allocation6 + $0x374] ss:$8 sps:$4 sm:$0xff]   ;;  %v1412_v50 = vld [vmem:[#allocation6 + $0x170] ss:$8 sps:$4 sm:$0xff]  }
  0x52   :  { %999 = vmatprep.subr.bf16.mxu0 %v1341_v51  ;;  %v1415_v51 = vld [vmem:[#allocation6 + $0x370] ss:$8 sps:$4 sm:$0xff]  }
  0x54   :  { %918 = vmatpush1.bf16.msra.mxu1 %v1343_v53  ;;  %v1423_v53 = vld [vmem:[#allocation6 + $0x384] ss:$8 sps:$4 sm:$0xff]  }
  0x55   :  { %1000 = vmatpush1.bf16.msra.mxu0 %v1344_v56  ;;  %919 = vmatprep.subr.bf16.mxu1 %v1345_v57  ;;  %v1426_v56 = vld [vmem:[#allocation6 + $0x194] ss:$8 sps:$4 sm:$0xff]  }
  0x56   :  { %1001 = vmatprep.subr.bf16.mxu0 %v1347_v58  ;;  %v1429_v57 = vld [vmem:[#allocation6 + $0x394] ss:$8 sps:$4 sm:$0xff]   ;;  %v1424_v58 = vld [vmem:[#allocation6 + $0x190] ss:$8 sps:$4 sm:$0xff]  }
  0x58   :  { %920 = vmatpush1.bf16.msra.mxu1 %v1349_v61  ;;  %v1435_v61 = vld [vmem:[#allocation6 + $0x3a4] ss:$8 sps:$4 sm:$0xff]  }
  0x59   :  { %1002 = vmatpush1.bf16.msra.mxu0 %v1350_v0  ;;  %921 = vmatprep.subr.bf16.mxu1 %v1351_v1  ;;  %v1438_v0 = vld [vmem:[#allocation6 + $0x1b4] ss:$8 sps:$4 sm:$0xff]  }
  0x5a   :  { %1003 = vmatprep.subr.bf16.mxu0 %v1353_v2  ;;  %v1441_v1 = vld [vmem:[#allocation6 + $0x3b4] ss:$8 sps:$4 sm:$0xff]   ;;  %v1436_v2 = vld [vmem:[#allocation6 + $0x1b0] ss:$8 sps:$4 sm:$0xff]  }
  0x5c   :  { %922 = vmatpush1.bf16.msra.mxu1 %v1355_v4  ;;  %v1444_v4 = vld [vmem:[#allocation6 + $0x1c4] ss:$8 sps:$4 sm:$0xff]  }
  0x5d   :  { %1004 = vmatpush1.bf16.msra.mxu0 %v1356_v5  ;;  %923 = vmatprep.subr.bf16.mxu1 %v1357_v6  ;;  %v1447_v5 = vld [vmem:[#allocation6 + $0x3c4] ss:$8 sps:$4 sm:$0xff]   ;;  %v1442_v6 = vld [vmem:[#allocation6 + $0x1c0] ss:$8 sps:$4 sm:$0xff]  }
  0x5e   :  { %1005 = vmatprep.subr.bf16.mxu0 %v1359_v7  ;;  %v1445_v7 = vld [vmem:[#allocation6 + $0x3c0] ss:$8 sps:$4 sm:$0xff]  }
  0x60   :  { %924 = vmatpush1.bf16.msra.mxu1 %v1361_v8  ;;  %v1450_v8 = vld [vmem:[#allocation6 + $0x1d4] ss:$8 sps:$4 sm:$0xff]  }
  0x61   :  { %1006 = vmatpush1.bf16.msra.mxu0 %v1362_v9  ;;  %925 = vmatprep.subr.bf16.mxu1 %v1363_v10  ;;  %v1453_v9 = vld [vmem:[#allocation6 + $0x3d4] ss:$8 sps:$4 sm:$0xff]   ;;  %v1448_v10 = vld [vmem:[#allocation6 + $0x1d0] ss:$8 sps:$4 sm:$0xff]  }
  0x62   :  { %1007 = vmatprep.subr.bf16.mxu0 %v1365_v11  ;;  %v1451_v11 = vld [vmem:[#allocation6 + $0x3d0] ss:$8 sps:$4 sm:$0xff]  }
  0x64   :  { %926 = vmatpush1.bf16.msra.mxu1 %v1367_v12  ;;  %v1456_v12 = vld [vmem:[#allocation6 + $0x1e4] ss:$8 sps:$4 sm:$0xff]  }
  0x65   :  { %1008 = vmatpush1.bf16.msra.mxu0 %v1368_v13  ;;  %936 = vmatprep.subr.bf16.mxu1 %v1371_v14  ;;  %v1459_v13 = vld [vmem:[#allocation6 + $0x3e4] ss:$8 sps:$4 sm:$0xff]   ;;  %v1454_v14 = vld [vmem:[#allocation6 + $0x1e0] ss:$8 sps:$4 sm:$0xff]  }
  0x66   :  { %1018 = vmatprep.subr.bf16.mxu0 %v1375_v15  ;;  %v1457_v15 = vld [vmem:[#allocation6 + $0x3e0] ss:$8 sps:$4 sm:$0xff]  }
  0x67   :  { %928 = vmatmul.mubr.bf16.vlgmr.msra.gmra.mrb[0].mxu1 %v1606_v17 }
  0x68   :  { %1010 = vmatmul.mubr.bf16.vlgmr.msra.gmra.mrb[0].mxu0 %v1609_v18  ;;  %937 = vmatpush1.bf16.msra.mxu1 %v1369_v16  ;;  %v1462_v16 = vld [vmem:[#allocation6 + $0x1f4] ss:$8 sps:$4 sm:$0xff]  }
  0x69   :  { %1019 = vmatpush1.bf16.msra.mxu0 %v1373_v19  ;;  %938 = vmatprep.subr.bf16.mxu1 %v1378_v20  ;;  %v1465_v19 = vld [vmem:[#allocation6 + $0x3f4] ss:$8 sps:$4 sm:$0xff]   ;;  %v1460_v20 = vld [vmem:[#allocation6 + $0x1f0] ss:$8 sps:$4 sm:$0xff]  }
  0x6a   :  { %1020 = vmatprep.subr.bf16.mxu0 %v1381_v21  ;;  %968 = vmatprep.mubr.bf16.mxu1 %v245_v22  ;;  %v1463_v21 = vld [vmem:[#allocation6 + $0x3f0] ss:$8 sps:$4 sm:$0xff]   ;;  %v243_v22 = vcombine.high %v1606_v17, %v1606_v17  ;;  %v1543_v17 = vmov 1983009808  }
  0x6b   :  { %1050 = vmatprep.mubr.bf16.mxu0 %v246_v23  ;;  %v244_v23 = vcombine.high %v1609_v18, %v1609_v18 }
  0x6c   :  { %939 = vmatpush1.bf16.msra.mxu1 %v1376_v24  ;;  %v49_v24 = vsub.s32 0, %v1596_v42 }
  0x6d   :  { %1021 = vmatpush1.bf16.msra.mxu0 %v1379_v25  ;;  %940 = vmatprep.subr.bf16.mxu1 %v1384_v26  ;;  %v53_v25 = vsub.s32 1, %v1596_v42  ;;  %v45_v26 = vld [vmem:[%s1638_s2] sm:$0x3]  ;;  %s1544_s2 = smov [#allocation8]  }
  0x6e   :  { %1022 = vmatprep.subr.bf16.mxu0 %v1387_v27  ;;  %v50_v27 = vrot.slane %v45_v26, %v49_v24  ;;  %s1115_s11 = sshll.u32 %s1544_s2, 4  ;;  %s1116_s11 = int_to_ptr.vmem [resolvable:$true] %s1115_s11 }
  0x6f   :  { %s1510_s12 = scalar_lea.vmem %s1116_s11, 32  ;;  %p1515_p3 = scmp.lt.s32.totalorder %s1116_s11, %s1116_s11 }
  0x70   :  { %941 = vmatpush1.bf16.msra.mxu1 %v1382_v28  ;;  %v54_v28 = vrot.slane %v45_v26, %v53_v25  ;;  %p1511_p2 = scmp.ne.s32.totalorder %s1116_s11, %s1510_s12  ;;  %p1516_p4 = scmp.lt.s32.totalorder %s1510_s12, %s1510_s12 }
  0x71   :  { %1023 = vmatpush1.bf16.msra.mxu0 %v1385_v29  ;;  %942 = vmatprep.subr.bf16.mxu1 %v1390_v30  ;;  %v1063_v30 = vunpack.c.l.s4 %v1543_v17 }
  0x72   :  { %1024 = vmatprep.subr.bf16.mxu0 %v1393_v31  ;;  %v55_v29 = vcombine.low %v50_v27, %v54_v28  ;;  %p1517_p5 = por %p1516_p4, %p1515_p3 }
  0x73   :  { %v1064_v31 = vunpack.c.0.s8 %v1063_v30 }
  0x74   :  { %943 = vmatpush1.bf16.msra.mxu1 %v1388_v32  ;;  %1125 = vst.sshfl [vmem:[#allocation2] sm:$0x33 pattern:$0x76325410] %v55_v29  ;;  %p1518_p6 = pnand %p1517_p5, %p1511_p2 }
  0x75   :  { %1025 = vmatpush1.bf16.msra.mxu0 %v1391_v33  ;;  %944 = vmatprep.subr.bf16.mxu1 %v1396_v34 }
  0x76   :  { %1026 = vmatprep.subr.bf16.mxu0 %v1399_v35 }
  0x78   :  { %945 = vmatpush1.bf16.msra.mxu1 %v1394_v36 }
  0x79   :  { %1027 = vmatpush1.bf16.msra.mxu0 %v1397_v37  ;;  %946 = vmatprep.subr.bf16.mxu1 %v1402_v38  ;;  %v1067_v37 = vsub.s32 %v1064_v31, %v1596_v42 }
  0x7a   :  { %1028 = vmatprep.subr.bf16.mxu0 %v1405_v39 }
  0x7c   :  { %947 = vmatpush1.bf16.msra.mxu1 %v1400_v40 }
  0x7d   :  { %1029 = vmatpush1.bf16.msra.mxu0 %v1403_v41  ;;  %948 = vmatprep.subr.bf16.mxu1 %v1408_v43 }
  0x7e   :  { %1030 = vmatprep.subr.bf16.mxu0 %v1411_v44  ;;  %v65_v44 = vld [vmem:[#allocation2] sm:$0xf] }
  0x80   :  { %949 = vmatpush1.bf16.msra.mxu1 %v1406_v45 }
  0x81   :  { %1031 = vmatpush1.bf16.msra.mxu0 %v1409_v46  ;;  %950 = vmatprep.subr.bf16.mxu1 %v1414_v47 }
  0x82   :  { %1032 = vmatprep.subr.bf16.mxu0 %v1417_v48 }
  0x84   :  { %951 = vmatpush1.bf16.msra.mxu1 %v1412_v50 }
  0x85   :  { %1033 = vmatpush1.bf16.msra.mxu0 %v1415_v51  ;;  %952 = vmatprep.subr.bf16.mxu1 %v1420_v52 }
  0x86   :  { %1034 = vmatprep.subr.bf16.mxu0 %v1423_v53 }
  0x88   :  { %953 = vmatpush1.bf16.msra.mxu1 %v1418_v54 }
  0x89   :  { %1035 = vmatpush1.bf16.msra.mxu0 %v1421_v55  ;;  %954 = vmatprep.subr.bf16.mxu1 %v1426_v56 }
  0x8a   :  { %1036 = vmatprep.subr.bf16.mxu0 %v1429_v57 }
  0x8c   :  { %955 = vmatpush1.bf16.msra.mxu1 %v1424_v58 }
  0x8d   :  { %1037 = vmatpush1.bf16.msra.mxu0 %v1427_v59  ;;  %956 = vmatprep.subr.bf16.mxu1 %v1432_v60 }
  0x8e   :  { %1038 = vmatprep.subr.bf16.mxu0 %v1435_v61 }
  0x90   :  { %957 = vmatpush1.bf16.msra.mxu1 %v1430_v62 }
  0x91   :  { %1039 = vmatpush1.bf16.msra.mxu0 %v1433_v63  ;;  %958 = vmatprep.subr.bf16.mxu1 %v1438_v0 }
  0x92   :  { %1040 = vmatprep.subr.bf16.mxu0 %v1441_v1 }
  0x94   :  { %959 = vmatpush1.bf16.msra.mxu1 %v1436_v2 }
  0x95   :  { %1041 = vmatpush1.bf16.msra.mxu0 %v1439_v3  ;;  %960 = vmatprep.subr.bf16.mxu1 %v1444_v4 }
  0x96   :  { %1042 = vmatprep.subr.bf16.mxu0 %v1447_v5 }
  0x98   :  { %961 = vmatpush1.bf16.msra.mxu1 %v1442_v6 }
  0x99   :  { %1043 = vmatpush1.bf16.msra.mxu0 %v1445_v7  ;;  %962 = vmatprep.subr.bf16.mxu1 %v1450_v8 }
  0x9a   :  { %1044 = vmatprep.subr.bf16.mxu0 %v1453_v9 }
  0x9c   :  { %963 = vmatpush1.bf16.msra.mxu1 %v1448_v10 }
  0x9d   :  { %1045 = vmatpush1.bf16.msra.mxu0 %v1451_v11  ;;  %964 = vmatprep.subr.bf16.mxu1 %v1456_v12 }
  0x9e   :  { %1046 = vmatprep.subr.bf16.mxu0 %v1459_v13 }
  0xa0   :  { %965 = vmatpush1.bf16.msra.mxu1 %v1454_v14 }
  0xa1   :  { %1047 = vmatpush1.bf16.msra.mxu0 %v1457_v15  ;;  %966 = vmatprep.subr.bf16.mxu1 %v1462_v16 }
  0xa2   :  { %1048 = vmatprep.subr.bf16.mxu0 %v1465_v19 }
  0xa4   :  { %967 = vmatpush1.bf16.msra.mxu1 %v1460_v20 }
  0xa5   :  { %1049 = vmatpush1.bf16.msra.mxu0 %v1463_v21 }
  0xa7   :  { %969 = vmatmul.mubr.bf16.vlgmr.msra.gmra.mrb[0].mxu1 %v243_v22 }
  0xa8   :  { %1051 = vmatmul.mubr.bf16.vlgmr.msra.gmra.mrb[0].mxu0 %v244_v23 }
 0x17a   :  { %v970_v18 = vpop.f32.mrb[0].mxu1 }
 0x17b   :  { %v1052_v32 = vpop.f32.mrb[0].mxu0  ;;  %v972_v34 = vpop.f32.mrb[1].mxu1 }
 0x17c   :  { %v1256_v33 = vadd.f32 %v1052_v32, %v970_v18  ;;  %v1054_v35 = vpop.f32.mrb[1].mxu0  ;;  %v974_v38 = vpop.f32.mrb[2].mxu1 }
 0x17d   :  { %v1257_v36 = vadd.f32 %v1054_v35, %v972_v34  ;;  %v1056_v39 = vpop.f32.mrb[2].mxu0  ;;  %v975_v40 = vpop.f32.mrb[3].mxu1 }
 0x17e   :  { %v1057_v41 = vpop.f32.mrb[3].mxu0 }
 0x17f   :  { %v1061_v43 = vcombine.low %v1256_v33, %v1257_v36 }
 0x181   :  { %v1068_v45 = vrot.slane %v1061_v43, %v1067_v37 }
 0x183   :  { %v1070_v46 = vadd.f32 %v1068_v45, %v65_v44 }
 0x185   :  { %1071 = vst [vmem:[#allocation2] sm:$0xf] %v1070_v46 }
 0x18c   :  { %v1075_v47 = vld [vmem:[#allocation2] sm:$0xf] }
 0x18d   :  { %v1076_v48 = vmax.f32 %v1075_v47, 0.0 }
 0x18f   :  { %v1084_v50 = vrot.slane %v1076_v48, %v1067_v37 }
 0x191   :  { %v1085_v51 = vcombine.high %v1084_v50, %v1084_v50 }
 0x193   :  { %v1254_v52 = vpack.c.bf16 %v1085_v51, %v1084_v50 }
 0x195   :  { %v1099_v53 = vrot.slane %v1254_v52, %v1599_v49 }
 0x197   :  { %1255 = vst.sshfl [vmem:[#allocation8] sm:$0x5 pattern:$0x73625140] %v1099_v53 }
 0x198   :  { %1521 = shalt.err (!%p1518_p6)
}
 0x199   :  { %s1522_s15 = scalar_lea.hbm %s1639_s3, 32 }
 0x19a   :  { %p1523_p7 = scmp.ne.s32.totalorder %s1639_s3, %s1522_s15  ;;  %p1526_p8 = scmp.lt.u32.totalorder %s1522_s15, %s1639_s3 }
 0x19c   :  { %p1528_p9 = pnand %p1526_p8, %p1523_p7 }
 0x19e   :  { %1531 = shalt.err (!%p1528_p9)
}
 0x19f   :  { %1118 = dma.vmem_to_hbm [thread:$0]  %s1116_s11, 32, %s1639_s3, [#allocation5]  }
 0x1a0   :  { %1536 = dma.done.wait [#allocation5], 32  }
 0x1a1   :  { %1537 = vsyncadd [#allocation5], 4294967264 }
 0x1a2   :  { %1122 = vsyncpa [#allocation4], 1 }
 0x1a3   :  { %1123 = vsyncpa [#allocation7], 1 }
 0x1a4   :  { %1124 = vsyncpa [#allocation5], 1 }

</bundles_post_ra>
